<compile_context>
chip_gen: v7x
topology: tpu7x:2x2x1
jax: 0.10.0
libtpu: 0.0.40
codegen_flags: <defaults>
</compile_context>

<pallas_src>
import functools
import math

import jax
import jax.numpy as jnp
from jax.experimental import pallas as pl
from jax.experimental.pallas import tpu as pltpu

_LANES = 128
_SUBLANES = 8
_MAX_CHUNK_ROWS = 32       # rows per inner-loop chunk (multiple of 8)
_N_SLOTS = 7               # partial-sum slots (some unused in binary mode)
_CORE_SPLIT = 2            # leading "parallel" grid axis (v7x has 2 TensorCores)


def _loss_kernel(preds_ref, targets_ref, out_ref, *, tile_rows, chunk_rows,
                 total_elems, binary_targets):
    c = pl.program_id(0)                 # core-split index ("parallel")
    i = pl.program_id(1)                 # row-tile index within core ("arbitrary")
    tiles_per_core = pl.num_programs(1)

    @pl.when(i == 0)
    def _():
        out_ref[...] = jnp.zeros_like(out_ref)

    # Logical (un-clamped) element offset of this tile.  For duplicate / ragged
    # tiles this exceeds `total_elems` and the mask below zeroes every
    # contribution.  (int32: fine for < 2^31 elements.)
    tile_idx = c * tiles_per_core + i
    tile_start = tile_idx * (tile_rows * _LANES)

    # Per-chunk element offsets — hoisted out of the loop (not CSE'd by JAX).
    row_off = jax.lax.broadcasted_iota(jnp.int32, (chunk_rows, _LANES), 0)
    lane_off = jax.lax.broadcasted_iota(jnp.int32, (chunk_rows, _LANES), 1)
    offs = row_off * _LANES + lane_off

    sub = chunk_rows // _SUBLANES
    neg_hundred = jnp.float32(-100.0)    # PyTorch BCELoss log clamp

    def psum(x):
        # (chunk, 128) -> (chunk/8, 8, 128) -> sum leading axis: pure VPU adds.
        return jnp.sum(x.reshape(sub, _SUBLANES, _LANES), axis=0)

    def chunk_body(ci, carry):
        row0 = pl.multiple_of(ci * chunk_rows, chunk_rows)
        p_raw = preds_ref[pl.ds(row0, chunk_rows), :]
        t_raw = targets_ref[pl.ds(row0, chunk_rows), :]

        remaining = total_elems - (tile_start + row0 * _LANES)
        valid = offs < remaining
        # Sanitize BEFORE the logs so ragged-tile garbage cannot inject NaNs.
        p = jnp.where(valid, p_raw.astype(jnp.float32), 0.0)
        t = jnp.where(valid, t_raw.astype(jnp.float32), 0.0)

        if binary_targets:
            # Single log per element; masked-out elements give log(1) = 0.
            sel = jnp.where(t > 0.0, p, 1.0 - p)
            bce = -jnp.maximum(jnp.log(sel), neg_hundred)
            a_pt, a_p, a_t, a_tb, a_b = carry
            return (a_pt + psum(p * t),
                    a_p + psum(p),
                    a_t + psum(t),
                    a_tb + psum(t * bce),
                    a_b + psum(bce))

        m = valid.astype(jnp.float32)
        comp = jnp.where(t == 0.0, m, 0.0)          # logical_not(targets), masked
        log_p = jnp.maximum(jnp.log(p), neg_hundred)
        log_1mp = jnp.maximum(jnp.log(1.0 - p), neg_hundred)
        bce = -(t * log_p + (1.0 - t) * log_1mp)    # 0 for masked elements
        a_pt, a_p, a_t, a_c, a_tb, a_cb, a_b = carry
        return (a_pt + psum(p * t),
                a_p + psum(p),
                a_t + psum(t),
                a_c + psum(comp),
                a_tb + psum(t * bce),
                a_cb + psum(comp * bce),
                a_b + psum(bce))

    n_carry = 5 if binary_targets else 7
    zero = jnp.zeros((_SUBLANES, _LANES), jnp.float32)
    carry = jax.lax.fori_loop(0, tile_rows // chunk_rows, chunk_body,
                              (zero,) * n_carry)

    slots = (0, 1, 2, 4, 6) if binary_targets else (0, 1, 2, 3, 4, 5, 6)
    for s, v in zip(slots, carry):
        out_ref[0, s] += v


def _round_up(x, m):
    return ((x + m - 1) // m) * m


def nuclick_loss(preds, targets, smooth=1.0, max_tile_rows=4096,
                 binary_targets=False):
    """NuClick loss = SoftDice(preds, targets) + mean(weights * BCE(preds, targets)).

    `preds` / `targets` may be any float/bool dtype; they are streamed in their
    native dtype and cast to f32 on-chip.  Set `binary_targets=True` only if
    targets are exactly {0, 1} (enables the single-log fast path).
    """
    assert preds.shape == targets.shape
    total = math.prod(preds.shape)
    assert total > 0

    p_flat = preds.reshape(-1)
    t_flat = targets.reshape(-1)

    rem = total % (_SUBLANES * _LANES)
    if rem:
        # TODO(synk): rare path (total not a multiple of 1024) still pays one
        # full-array pad copy to obtain an 8-row-aligned (rows, 128) view; the
        # in-kernel mask ignores the padded elements either way.
        pad = (_SUBLANES * _LANES) - rem
        p_flat = jnp.pad(p_flat, (0, pad))
        t_flat = jnp.pad(t_flat, (0, pad))
    rows = p_flat.shape[0] // _LANES            # multiple of 8
    p2 = p_flat.reshape(rows, _LANES)
    t2 = t_flat.reshape(rows, _LANES)

    # Tile rows: as large as allowed, never exceeding the array, multiple of 8.
    tr = min(max(max_tile_rows, _SUBLANES), rows)
    tr -= tr % _SUBLANES
    # Inner-loop chunk must divide the tile and be a multiple of 8.
    if tr % _MAX_CHUNK_ROWS == 0:
        chunk = _MAX_CHUNK_ROWS
    elif tr % 16 == 0:
        chunk = 16
    else:
        chunk = _SUBLANES

    tiles_total = pl.cdiv(rows, tr)
    tiles_per_core = pl.cdiv(tiles_total, _CORE_SPLIT)
    last_tile = tiles_total - 1

    def row_block(c, i):
        # Clamp so no block index runs past the array; out-of-range (duplicate)
        # tiles are zeroed by the in-kernel mask instead of reading garbage.
        return (jnp.minimum(c * tiles_per_core + i, last_tile), 0)

    in_bytes = (jnp.dtype(preds.dtype).itemsize
                + jnp.dtype(targets.dtype).itemsize)
    # 2 pipeline buffers x both input blocks + output block + headroom.
    vmem_limit = int(min(2 * tr * _LANES * in_bytes * 2 + (8 << 20), 64 << 20))

    kernel = functools.partial(
        _loss_kernel,
        tile_rows=tr,
        chunk_rows=chunk,
        total_elems=total,
        binary_targets=binary_targets,
    )

    parts = pl.pallas_call(
        kernel,
        out_shape=jax.ShapeDtypeStruct(
            (_CORE_SPLIT, _N_SLOTS, _SUBLANES, _LANES), jnp.float32),
        grid_spec=pltpu.PrefetchScalarGridSpec(
            num_scalar_prefetch=0,
            grid=(_CORE_SPLIT, tiles_per_core),
            in_specs=[
                pl.BlockSpec((tr, _LANES), row_block),
                pl.BlockSpec((tr, _LANES), row_block),
            ],
            out_specs=pl.BlockSpec(
                (1, _N_SLOTS, _SUBLANES, _LANES), lambda c, i: (c, 0, 0, 0)),
        ),
        compiler_params=pltpu.CompilerParams(
            dimension_semantics=("parallel", "arbitrary"),
            vmem_limit_bytes=vmem_limit,
        ),
    )(p2, t2)

    # Tiny finalize on the (2, 7, 8, 128) per-core partial sums (plain JAX).
    sums = jnp.sum(parts, axis=(0, 2, 3))
    inter, sum_p, sum_t = sums[0], sums[1], sums[2]
    if binary_targets:
        s_tb, s_b = sums[4], sums[6]
        sum_c = jnp.float32(total) - sum_t
        s_cb = s_b - s_tb
    else:
        sum_c, s_tb, s_cb, s_b = sums[3], sums[4], sums[5], sums[6]

    # NOTE: like the PyTorch reference, alpha is inf/nan if targets are all zero.
    alpha = jnp.maximum(sum_c / sum_t, jnp.float32(1.0))
    bce_loss = (alpha * alpha * s_tb + alpha * s_cb + s_b) / jnp.float32(total)
    dice = (2.0 * inter + smooth) / (sum_p + sum_t + smooth)
    return (1.0 - dice) + bce_loss


def _reference_loss(preds, targets, smooth=1.0):
    """Pure-JAX reference mirroring the PyTorch module."""
    p = preds.astype(jnp.float32)
    t = targets.astype(jnp.float32)
    comp = (t == 0.0).astype(jnp.float32)
    alpha = jnp.maximum(comp.sum() / t.sum(), 1.0)
    weights = alpha ** 2 * t + alpha * comp + 1.0
    log_p = jnp.maximum(jnp.log(p), -100.0)
    log_1mp = jnp.maximum(jnp.log(1.0 - p), -100.0)
    bce = -(t * log_p + (1.0 - t) * log_1mp)
    bce_loss = jnp.mean(weights * bce)
    inter = jnp.sum(p * t)
    dice = (2.0 * inter + smooth) / (jnp.sum(p) + jnp.sum(t) + smooth)
    return (1.0 - dice) + bce_loss


if __name__ == "__main__":
    key = jax.random.PRNGKey(0)
    k1, k2, k3, k4, k5, k6 = jax.random.split(key, 6)

    # Test 1: small (2,1,16,16) f32 — single ragged tile; second core-group is
    #         fully out of range and must be masked to zero contribution.
    shape1 = (2, 1, 16, 16)
    preds1 = jax.nn.sigmoid(jax.random.normal(k1, shape1, dtype=jnp.float32))
    targets1 = (jax.random.uniform(k2, shape1) > 0.7).astype(jnp.float32)
    loss1 = jax.block_until_ready(nuclick_loss(preds1, targets1))
    ref1 = _reference_loss(preds1, targets1)
    assert jnp.allclose(loss1, ref1, rtol=2e-5, atol=2e-5), (loss1, ref1)

    # Test 2: bf16 preds (native-dtype streaming), multiple tiles on both
    #         core-groups (grid (2, 2)) exercising cross-tile accumulation.
    shape2 = (4, 4, 32, 32)
    preds2 = jax.nn.sigmoid(
        jax.random.normal(k3, shape2, dtype=jnp.float32)).astype(jnp.bfloat16)
    targets2 = (jax.random.uniform(k4, shape2) > 0.6).astype(jnp.float32)
    loss2 = jax.block_until_ready(nuclick_loss(preds2, targets2, max_tile_rows=32))
    ref2 = _reference_loss(preds2, targets2)
    assert jnp.allclose(loss2, ref2, rtol=2e-5, atol=2e-5), (loss2, ref2)

    # Test 3: binary-target single-log fast path on the same data.
    loss3 = jax.block_until_ready(
        nuclick_loss(preds2, targets2, max_tile_rows=32, binary_targets=True))
    assert jnp.allclose(loss3, ref2, rtol=2e-5, atol=2e-5), (loss3, ref2)

    # Test 4: total not a multiple of 128 -> lane-level tail masking (+ tiny pad).
    shape4 = (3, 7, 11)
    preds4 = jax.nn.sigmoid(jax.random.normal(k5, shape4, dtype=jnp.float32))
    targets4 = (jax.random.uniform(k6, shape4) > 0.5).astype(jnp.float32)
    loss4 = jax.block_until_ready(nuclick_loss(preds4, targets4))
    ref4 = _reference_loss(preds4, targets4)
    assert jnp.allclose(loss4, ref4, rtol=2e-5, atol=2e-5), (loss4, ref4)

    print("KERNEL_OK")
</pallas_src>

<mosaic_0001>
module attributes {stable_mosaic.version = 11 : i64} {
  func.func @_loss_kernel(%arg0: i32, %arg1: i32, %arg2: memref<8x128xf32, #tpu.memory_space<vmem>>, %arg3: memref<8x128xf32, #tpu.memory_space<vmem>>, %arg4: memref<1x7x8x128xf32, #tpu.memory_space<vmem>>) attributes {dimension_semantics = [#tpu.dimension_semantics<parallel>, #tpu.dimension_semantics<arbitrary>], iteration_bounds = array<i64: 2, 1>, scalar_prefetch = 0 : i64, scratch_operands = 0 : i64, tpu.core_type = #tpu.core_type<tc>, window_params = [{transform_indices = @transform_0, window_bounds = array<i64: 8, 128>}, {transform_indices = @transform_1, window_bounds = array<i64: 8, 128>}, {transform_indices = @transform_2, window_bounds = array<i64: 1, 7, 8, 128>}]} {
    %c0_i32 = arith.constant 0 : i32
    %0 = arith.cmpi eq, %arg1, %c0_i32 : i32
    %1 = arith.extui %0 : i1 to i32
    %c0_i32_0 = arith.constant 0 : i32
    %2 = arith.cmpi ne, %1, %c0_i32_0 : i32
    scf.if %2 {
      %cst_70 = arith.constant 0.000000e+00 : f32
      %114 = vector.broadcast %cst_70 : f32 to vector<1x7x8x128xf32>
      %c0_71 = arith.constant 0 : index
      %c0_72 = arith.constant 0 : index
      %c0_73 = arith.constant 0 : index
      %c0_74 = arith.constant 0 : index
      %115 = vector.load %arg4[%c0_71, %c0_72, %c0_73, %c0_74] : memref<1x7x8x128xf32, #tpu.memory_space<vmem>>, vector<1x7x8x128xf32>
      tpu.vector_store %arg4[%c0_71, %c0_72, %c0_73, %c0_74], %114 {strides = array<i32>} : memref<1x7x8x128xf32, #tpu.memory_space<vmem>>, vector<1x7x8x128xf32>,
    } else {
    }
    %c1_i32 = arith.constant 1 : i32
    %3 = arith.muli %arg0, %c1_i32 : i32
    %4 = arith.addi %3, %arg1 : i32
    %c1024_i32 = arith.constant 1024 : i32
    %5 = arith.muli %4, %c1024_i32 : i32
    %6 = tpu.iota {dimensions = array<i32: 0>} : vector<8x128xi32>
    %7 = tpu.iota {dimensions = array<i32: 1>} : vector<8x128xi32>
    %c128_i32 = arith.constant 128 : i32
    %8 = vector.broadcast %c128_i32 : i32 to vector<8x128xi32>
    %9 = arith.muli %6, %8 : vector<8x128xi32>
    %10 = arith.addi %9, %7 : vector<8x128xi32>
    %cst = arith.constant 0.000000e+00 : f32
    %11 = vector.broadcast %cst : f32 to vector<8x128xf32>
    %cst_1 = arith.constant -1.000000e+02 : f32
    %c0_i32_2 = arith.constant 0 : i32
    %c8_i32 = arith.constant 8 : i32
    %12 = arith.muli %c0_i32_2, %c8_i32 : i32
    %13 = tpu.assume_multiple %12, 8 : i32
    %14 = arith.index_cast %13 : i32 to index
    %c0 = arith.constant 0 : index
    %15 = vector.load %arg2[%14, %c0] : memref<8x128xf32, #tpu.memory_space<vmem>>, vector<8x128xf32>
    %16 = arith.index_cast %13 : i32 to index
    %c0_3 = arith.constant 0 : index
    %17 = vector.load %arg3[%16, %c0_3] : memref<8x128xf32, #tpu.memory_space<vmem>>, vector<8x128xf32>
    %c128_i32_4 = arith.constant 128 : i32
    %18 = arith.muli %13, %c128_i32_4 : i32
    %19 = arith.addi %5, %18 : i32
    %c512_i32 = arith.constant 512 : i32
    %20 = arith.subi %c512_i32, %19 : i32
    %21 = vector.broadcast %20 : i32 to vector<8x128xi32>
    %22 = arith.cmpi slt, %10, %21 : vector<8x128xi32>
    %cst_5 = arith.constant 0.000000e+00 : f32
    %23 = vector.broadcast %cst_5 : f32 to vector<8x128xf32>
    %24 = arith.select %22, %15, %23 : vector<8x128xi1>, vector<8x128xf32>
    %cst_6 = arith.constant 0.000000e+00 : f32
    %25 = vector.broadcast %cst_6 : f32 to vector<8x128xf32>
    %26 = arith.select %22, %17, %25 : vector<8x128xi1>, vector<8x128xf32>
    %27 = arith.extui %22 : vector<8x128xi1> to vector<8x128xi32>
    %28 = arith.sitofp %27 : vector<8x128xi32> to vector<8x128xf32>
    %cst_7 = arith.constant 0.000000e+00 : f32
    %29 = vector.broadcast %cst_7 : f32 to vector<8x128xf32>
    %30 = arith.cmpf oeq, %26, %29 : vector<8x128xf32>
    %cst_8 = arith.constant 0.000000e+00 : f32
    %31 = vector.broadcast %cst_8 : f32 to vector<8x128xf32>
    %32 = arith.select %30, %28, %31 : vector<8x128xi1>, vector<8x128xf32>
    %33 = math.log %24 : vector<8x128xf32>
    %34 = vector.broadcast %cst_1 : f32 to vector<8x128xf32>
    %35 = arith.maximumf %33, %34 : vector<8x128xf32>
    %cst_9 = arith.constant 1.000000e+00 : f32
    %36 = vector.broadcast %cst_9 : f32 to vector<8x128xf32>
    %37 = arith.subf %36, %24 : vector<8x128xf32>
    %38 = math.log %37 : vector<8x128xf32>
    %39 = vector.broadcast %cst_1 : f32 to vector<8x128xf32>
    %40 = arith.maximumf %38, %39 : vector<8x128xf32>
    %41 = arith.mulf %26, %35 : vector<8x128xf32>
    %cst_10 = arith.constant 1.000000e+00 : f32
    %42 = vector.broadcast %cst_10 : f32 to vector<8x128xf32>
    %43 = arith.subf %42, %26 : vector<8x128xf32>
    %44 = arith.mulf %43, %40 : vector<8x128xf32>
    %45 = arith.addf %41, %44 : vector<8x128xf32>
    %cst_11 = arith.constant 0.000000e+00 : f32
    %46 = vector.broadcast %cst_11 : f32 to vector<8x128xf32>
    %47 = arith.subf %46, %45 : vector<8x128xf32>
    %48 = arith.mulf %24, %26 : vector<8x128xf32>
    %49 = vector.shape_cast %48 : vector<8x128xf32> to vector<1x8x128xf32>
    %cst_12 = arith.constant dense<0.000000e+00> : vector<8x128xf32>
    %50 = vector.multi_reduction <add>, %49, %cst_12 [0] : vector<1x8x128xf32> to vector<8x128xf32>
    %51 = arith.addf %11, %50 : vector<8x128xf32>
    %52 = vector.shape_cast %24 : vector<8x128xf32> to vector<1x8x128xf32>
    %cst_13 = arith.constant dense<0.000000e+00> : vector<8x128xf32>
    %53 = vector.multi_reduction <add>, %52, %cst_13 [0] : vector<1x8x128xf32> to vector<8x128xf32>
    %54 = arith.addf %11, %53 : vector<8x128xf32>
    %55 = vector.shape_cast %26 : vector<8x128xf32> to vector<1x8x128xf32>
    %cst_14 = arith.constant dense<0.000000e+00> : vector<8x128xf32>
    %56 = vector.multi_reduction <add>, %55, %cst_14 [0] : vector<1x8x128xf32> to vector<8x128xf32>
    %57 = arith.addf %11, %56 : vector<8x128xf32>
    %58 = vector.shape_cast %32 : vector<8x128xf32> to vector<1x8x128xf32>
    %cst_15 = arith.constant dense<0.000000e+00> : vector<8x128xf32>
    %59 = vector.multi_reduction <add>, %58, %cst_15 [0] : vector<1x8x128xf32> to vector<8x128xf32>
    %60 = arith.addf %11, %59 : vector<8x128xf32>
    %61 = arith.mulf %26, %47 : vector<8x128xf32>
    %62 = vector.shape_cast %61 : vector<8x128xf32> to vector<1x8x128xf32>
    %cst_16 = arith.constant dense<0.000000e+00> : vector<8x128xf32>
    %63 = vector.multi_reduction <add>, %62, %cst_16 [0] : vector<1x8x128xf32> to vector<8x128xf32>
    %64 = arith.addf %11, %63 : vector<8x128xf32>
    %65 = arith.mulf %32, %47 : vector<8x128xf32>
    %66 = vector.shape_cast %65 : vector<8x128xf32> to vector<1x8x128xf32>
    %cst_17 = arith.constant dense<0.000000e+00> : vector<8x128xf32>
    %67 = vector.multi_reduction <add>, %66, %cst_17 [0] : vector<1x8x128xf32> to vector<8x128xf32>
    %68 = arith.addf %11, %67 : vector<8x128xf32>
    %69 = vector.shape_cast %47 : vector<8x128xf32> to vector<1x8x128xf32>
    %cst_18 = arith.constant dense<0.000000e+00> : vector<8x128xf32>
    %70 = vector.multi_reduction <add>, %69, %cst_18 [0] : vector<1x8x128xf32> to vector<8x128xf32>
    %71 = arith.addf %11, %70 : vector<8x128xf32>
    %c1_i32_19 = arith.constant 1 : i32
    %c0_20 = arith.constant 0 : index
    %c0_21 = arith.constant 0 : index
    %c0_22 = arith.constant 0 : index
    %c0_23 = arith.constant 0 : index
    %72 = vector.load %arg4[%c0_20, %c0_21, %c0_22, %c0_23] : memref<1x7x8x128xf32, #tpu.memory_space<vmem>>, vector<1x1x8x128xf32>
    %73 = vector.shape_cast %72 : vector<1x1x8x128xf32> to vector<8x128xf32>
    %74 = arith.addf %73, %51 : vector<8x128xf32>
    %c0_24 = arith.constant 0 : index
    %c0_25 = arith.constant 0 : index
    %c0_26 = arith.constant 0 : index
    %c0_27 = arith.constant 0 : index
    %75 = vector.load %arg4[%c0_24, %c0_25, %c0_26, %c0_27] : memref<1x7x8x128xf32, #tpu.memory_space<vmem>>, vector<1x1x8x128xf32>
    %76 = vector.shape_cast %75 : vector<1x1x8x128xf32> to vector<8x128xf32>
    %77 = vector.shape_cast %74 : vector<8x128xf32> to vector<1x1x8x128xf32>
    tpu.vector_store %arg4[%c0_24, %c0_25, %c0_26, %c0_27], %77 {strides = array<i32>} : memref<1x7x8x128xf32, #tpu.memory_space<vmem>>, vector<1x1x8x128xf32>,
    %c0_28 = arith.constant 0 : index
    %c1 = arith.constant 1 : index
    %c0_29 = arith.constant 0 : index
    %c0_30 = arith.constant 0 : index
    %78 = vector.load %arg4[%c0_28, %c1, %c0_29, %c0_30] : memref<1x7x8x128xf32, #tpu.memory_space<vmem>>, vector<1x1x8x128xf32>
    %79 = vector.shape_cast %78 : vector<1x1x8x128xf32> to vector<8x128xf32>
    %80 = arith.addf %79, %54 : vector<8x128xf32>
    %c0_31 = arith.constant 0 : index
    %c1_32 = arith.constant 1 : index
    %c0_33 = arith.constant 0 : index
    %c0_34 = arith.constant 0 : index
    %81 = vector.load %arg4[%c0_31, %c1_32, %c0_33, %c0_34] : memref<1x7x8x128xf32, #tpu.memory_space<vmem>>, vector<1x1x8x128xf32>
    %82 = vector.shape_cast %81 : vector<1x1x8x128xf32> to vector<8x128xf32>
    %83 = vector.shape_cast %80 : vector<8x128xf32> to vector<1x1x8x128xf32>
    tpu.vector_store %arg4[%c0_31, %c1_32, %c0_33, %c0_34], %83 {strides = array<i32>} : memref<1x7x8x128xf32, #tpu.memory_space<vmem>>, vector<1x1x8x128xf32>,
    %c0_35 = arith.constant 0 : index
    %c2 = arith.constant 2 : index
    %c0_36 = arith.constant 0 : index
    %c0_37 = arith.constant 0 : index
    %84 = vector.load %arg4[%c0_35, %c2, %c0_36, %c0_37] : memref<1x7x8x128xf32, #tpu.memory_space<vmem>>, vector<1x1x8x128xf32>
    %85 = vector.shape_cast %84 : vector<1x1x8x128xf32> to vector<8x128xf32>
    %86 = arith.addf %85, %57 : vector<8x128xf32>
    %c0_38 = arith.constant 0 : index
    %c2_39 = arith.constant 2 : index
    %c0_40 = arith.constant 0 : index
    %c0_41 = arith.constant 0 : index
    %87 = vector.load %arg4[%c0_38, %c2_39, %c0_40, %c0_41] : memref<1x7x8x128xf32, #tpu.memory_space<vmem>>, vector<1x1x8x128xf32>
    %88 = vector.shape_cast %87 : vector<1x1x8x128xf32> to vector<8x128xf32>
    %89 = vector.shape_cast %86 : vector<8x128xf32> to vector<1x1x8x128xf32>
    tpu.vector_store %arg4[%c0_38, %c2_39, %c0_40, %c0_41], %89 {strides = array<i32>} : memref<1x7x8x128xf32, #tpu.memory_space<vmem>>, vector<1x1x8x128xf32>,
    %c0_42 = arith.constant 0 : index
    %c3 = arith.constant 3 : index
    %c0_43 = arith.constant 0 : index
    %c0_44 = arith.constant 0 : index
    %90 = vector.load %arg4[%c0_42, %c3, %c0_43, %c0_44] : memref<1x7x8x128xf32, #tpu.memory_space<vmem>>, vector<1x1x8x128xf32>
    %91 = vector.shape_cast %90 : vector<1x1x8x128xf32> to vector<8x128xf32>
    %92 = arith.addf %91, %60 : vector<8x128xf32>
    %c0_45 = arith.constant 0 : index
    %c3_46 = arith.constant 3 : index
    %c0_47 = arith.constant 0 : index
    %c0_48 = arith.constant 0 : index
    %93 = vector.load %arg4[%c0_45, %c3_46, %c0_47, %c0_48] : memref<1x7x8x128xf32, #tpu.memory_space<vmem>>, vector<1x1x8x128xf32>
    %94 = vector.shape_cast %93 : vector<1x1x8x128xf32> to vector<8x128xf32>
    %95 = vector.shape_cast %92 : vector<8x128xf32> to vector<1x1x8x128xf32>
    tpu.vector_store %arg4[%c0_45, %c3_46, %c0_47, %c0_48], %95 {strides = array<i32>} : memref<1x7x8x128xf32, #tpu.memory_space<vmem>>, vector<1x1x8x128xf32>,
    %c0_49 = arith.constant 0 : index
    %c4 = arith.constant 4 : index
    %c0_50 = arith.constant 0 : index
    %c0_51 = arith.constant 0 : index
    %96 = vector.load %arg4[%c0_49, %c4, %c0_50, %c0_51] : memref<1x7x8x128xf32, #tpu.memory_space<vmem>>, vector<1x1x8x128xf32>
    %97 = vector.shape_cast %96 : vector<1x1x8x128xf32> to vector<8x128xf32>
    %98 = arith.addf %97, %64 : vector<8x128xf32>
    %c0_52 = arith.constant 0 : index
    %c4_53 = arith.constant 4 : index
    %c0_54 = arith.constant 0 : index
    %c0_55 = arith.constant 0 : index
    %99 = vector.load %arg4[%c0_52, %c4_53, %c0_54, %c0_55] : memref<1x7x8x128xf32, #tpu.memory_space<vmem>>, vector<1x1x8x128xf32>
    %100 = vector.shape_cast %99 : vector<1x1x8x128xf32> to vector<8x128xf32>
    %101 = vector.shape_cast %98 : vector<8x128xf32> to vector<1x1x8x128xf32>
    tpu.vector_store %arg4[%c0_52, %c4_53, %c0_54, %c0_55], %101 {strides = array<i32>} : memref<1x7x8x128xf32, #tpu.memory_space<vmem>>, vector<1x1x8x128xf32>,
    %c0_56 = arith.constant 0 : index
    %c5 = arith.constant 5 : index
    %c0_57 = arith.constant 0 : index
    %c0_58 = arith.constant 0 : index
    %102 = vector.load %arg4[%c0_56, %c5, %c0_57, %c0_58] : memref<1x7x8x128xf32, #tpu.memory_space<vmem>>, vector<1x1x8x128xf32>
    %103 = vector.shape_cast %102 : vector<1x1x8x128xf32> to vector<8x128xf32>
    %104 = arith.addf %103, %68 : vector<8x128xf32>
    %c0_59 = arith.constant 0 : index
    %c5_60 = arith.constant 5 : index
    %c0_61 = arith.constant 0 : index
    %c0_62 = arith.constant 0 : index
    %105 = vector.load %arg4[%c0_59, %c5_60, %c0_61, %c0_62] : memref<1x7x8x128xf32, #tpu.memory_space<vmem>>, vector<1x1x8x128xf32>
    %106 = vector.shape_cast %105 : vector<1x1x8x128xf32> to vector<8x128xf32>
    %107 = vector.shape_cast %104 : vector<8x128xf32> to vector<1x1x8x128xf32>
    tpu.vector_store %arg4[%c0_59, %c5_60, %c0_61, %c0_62], %107 {strides = array<i32>} : memref<1x7x8x128xf32, #tpu.memory_space<vmem>>, vector<1x1x8x128xf32>,
    %c0_63 = arith.constant 0 : index
    %c6 = arith.constant 6 : index
    %c0_64 = arith.constant 0 : index
    %c0_65 = arith.constant 0 : index
    %108 = vector.load %arg4[%c0_63, %c6, %c0_64, %c0_65] : memref<1x7x8x128xf32, #tpu.memory_space<vmem>>, vector<1x1x8x128xf32>
    %109 = vector.shape_cast %108 : vector<1x1x8x128xf32> to vector<8x128xf32>
    %110 = arith.addf %109, %71 : vector<8x128xf32>
    %c0_66 = arith.constant 0 : index
    %c6_67 = arith.constant 6 : index
    %c0_68 = arith.constant 0 : index
    %c0_69 = arith.constant 0 : index
    %111 = vector.load %arg4[%c0_66, %c6_67, %c0_68, %c0_69] : memref<1x7x8x128xf32, #tpu.memory_space<vmem>>, vector<1x1x8x128xf32>
    %112 = vector.shape_cast %111 : vector<1x1x8x128xf32> to vector<8x128xf32>
    %113 = vector.shape_cast %110 : vector<8x128xf32> to vector<1x1x8x128xf32>
    tpu.vector_store %arg4[%c0_66, %c6_67, %c0_68, %c0_69], %113 {strides = array<i32>} : memref<1x7x8x128xf32, #tpu.memory_space<vmem>>, vector<1x1x8x128xf32>,
    return
  }
  func.func @transform_0(%arg0: i32, %arg1: i32) -> (i32, i32) {
    %c1_i32 = arith.constant 1 : i32
    %0 = arith.muli %arg0, %c1_i32 : i32
    %1 = arith.addi %0, %arg1 : i32
    %c0_i32 = arith.constant 0 : i32
    %2 = arith.minsi %1, %c0_i32 : i32
    %c0_i32_0 = arith.constant 0 : i32
    %c0_i32_1 = arith.constant 0 : i32
    return %2, %c0_i32_0 : i32, i32
  }
  func.func @transform_1(%arg0: i32, %arg1: i32) -> (i32, i32) {
    %c1_i32 = arith.constant 1 : i32
    %0 = arith.muli %arg0, %c1_i32 : i32
    %1 = arith.addi %0, %arg1 : i32
    %c0_i32 = arith.constant 0 : i32
    %2 = arith.minsi %1, %c0_i32 : i32
    %c0_i32_0 = arith.constant 0 : i32
    %c0_i32_1 = arith.constant 0 : i32
    return %2, %c0_i32_0 : i32, i32
  }
  func.func @transform_2(%arg0: i32, %arg1: i32) -> (i32, i32, i32, i32) {
    %c0_i32 = arith.constant 0 : i32
    %c0_i32_0 = arith.constant 0 : i32
    %c0_i32_1 = arith.constant 0 : i32
    %c0_i32_2 = arith.constant 0 : i32
    return %arg0, %c0_i32, %c0_i32_0, %c0_i32_1 : i32, i32, i32, i32
  }
}

</mosaic_0001>

<bundles_post_ra>
// kernel: tpu_custom_call.1
= control target key start
LH: loop header
LB: loop body
LE: loop exit
PB: predicated region body
PF: predicated region fallthrough
CT: control target
= control target key end

     0   :  { %7 = vsyncpa [#allocation3], 0  ;;  %s965_s0 = inlined_call_operand.hbm [shape: f32[8,128], index: 0, kind: input, shape index: {}]   ;;  %s966_s1 = inlined_call_operand.hbm [shape: f32[8,128], index: 1, kind: input, shape index: {}]   ;;  %s967_s2 = inlined_call_operand.hbm [shape: f32[2,7,8,128], index: 2, kind: output, shape index: {}]  }
   0x1   :  { %9 = vsyncpa [#allocation3 + $0x1], 0 }
   0x2   :  { %10 = vsyncpa [#allocation6], 0 }
   0x3   :  { %12 = vsyncpa [#allocation6 + $0x1], 0 }
   0x4   :  { %13 = vsyncpa [#allocation4], 0 }
   0x5   :  { %15 = vsyncpa [#allocation4 + $0x1], 0  ;;  %s756_s9 = smov 0   ;;  %s758_s10 = smov 0  }
   0x6   :  { %s760_s11 = smov 0   ;;  %s762_s12 = smov 0  }
   0x7   :  { %s764_s13 = smov 0   ;;  %s766_s14 = smov 0  }
   0x8   :  { %s768_s15 = smov 0   ;;  %s770_s16 = smov 0  }
   0x9 LB: > { %s438_s17 = sadd.s32 4294967295, %s733_s16   ;;  %s439_s18 = sadd.s32 4294967294, %s733_s16   ;;  %s733_s16 = sphi %s770_s16, %s21_s16   ;;  %s729_s15 = sphi %s768_s15, %s988_s15   ;;  %s725_s14 = sphi %s766_s14, %s987_s14   ;;  %s721_s13 = sphi %s764_s13, %s955_s13   ;;  %s717_s12 = sphi %s762_s12, %s986_s12   ;;  %s713_s11 = sphi %s760_s11, %s985_s11   ;;  %s709_s10 = sphi %s758_s10, %s984_s10   ;;  %s705_s9 = sphi %s756_s9, %s983_s9  }
   0xa   : > { %s33_s19 = sadd.s32 1, %s729_s15  ;;  %p702_p1 = scmp.ne.s32.totalorder %s721_s13, 0 }
   0xb   : > { %p35_p0 = scmp.ge.s32.totalorder %s33_s19, 2  ;;  %p54_p2 = scmp.eq.s32.totalorder %s733_s16, 0 }
   0xc   : > { %p59_p3 = scmp.ne.s32.totalorder %s721_s13, %s717_s12  ;;  %p60_p5 = scmp.eq.s32.totalorder %s438_s17, 0 }
   0xd   : > { %s990_s19 = smov (%p35_p0, %s33_s19), 0  ;;  %p802_p4 = por %p702_p1, %p54_p2 }
   0xe   : > { %p806_p6 = por %p60_p5, %p59_p3  ;;  %s101_s22 = ssub.s32 %s729_s15, %s990_s19 }
   0xf   : > { %p102_p7 = scmp.eq.s32.totalorder %s101_s22, 0  ;;  %s104_s23 = sadd.s32 1, %s713_s11 }
  0x10   : > { %s971_s21 = scalar_select %p806_p6, 1, 0 }
  0x11   : > { %s814_s24 = scalar_select %p102_p7, %s713_s11, %s104_s23  }
  0x12   : > { %p114_p8 = scmp.ne.s32.totalorder %s713_s11, %s709_s10  ;;  %p115_p9 = scmp.eq.s32.totalorder %s438_s17, 1 }
  0x13   : > { %p120_p10 = scmp.ne.s32.totalorder %s709_s10, %s705_s9  ;;  %p121_p11 = scmp.eq.s32.totalorder %s439_s18, 1 }
  0x14   : > { %p820_p12 = por %p115_p9, %p114_p8  ;;  %p485_p1 = scmp.lt.s32.totalorder %s733_s16, 2 }
  0x15   : > { %p825_p0 = por %p121_p11, %p120_p10  ;;  %s735_s27 = smov [#allocation2]  }
  0x16   : > { %s972_s25 = scalar_select %p820_p12, 1, 0 }
  0x17   : > { %s973_s26 = scalar_select %p825_p0, 1, 0 }
  0x18   : > { %s155_s28 = sshll.u32 %s735_s27, 4  ;;  %p832_p2 = pnand %p485_p1, %p802_p4  ;;  %s156_s28 = int_to_ptr.vmem [resolvable:$true] %s155_s28 }
  0x19   : > { %s566_s4 = scalar_lea.hbm %s965_s0, 128 }
  0x1a   : > { %p567_p7 = scmp.ne.s32.totalorder %s965_s0, %s566_s4  ;;  %p568_p8 = pneg %p832_p2 }
  0x1b   : > { %p573_p10 = scmp.lt.u32.totalorder %s566_s4, %s566_s4  ;;  %p575_p11 = scmp.lt.u32.totalorder %s566_s4, %s965_s0 }
  0x1c   : > { %p569_p4 = pnand %p568_p8, %p567_p7 }
  0x1d   : > { %p576_p1 = por %p575_p11, %p573_p10 }
  0x1e   : > { %p570_p9 = pneg %p569_p4 }
  0x20   : > { %p577_p13 = pnand %p576_p1, %p570_p9 }
  0x22   : > { %580 = shalt.err (!%p577_p13)
}
  0x23   : > { %s581_s12 = scalar_lea.vmem %s156_s28, 128  ;;  %s588_s17 = scalar_lea.vmem %s156_s28, 256 }
  0x24   : > { %p582_p3 = scmp.ne.s32.totalorder %s156_s28, %s581_s12  ;;  %p589_p12 = scmp.lt.s32.totalorder %s156_s28, %s156_s28 }
  0x25   : > { %p590_p6 = scmp.lt.s32.totalorder %s588_s17, %s581_s12 }
  0x26   : > { %p584_p5 = pnand %p582_p3, %p568_p8 }
  0x27   : > { %p591_p7 = por %p590_p6, %p589_p12 }
  0x28   : > { %p585_p0 = pneg %p584_p5 }
  0x2a   : > { %p592_p4 = pnand %p591_p7, %p585_p0 }
  0x2c   : > { %595 = shalt.err (!%p592_p4)
}
  0x2d   : > { %477 = dma.hbm_to_vmem [thread:$0]  (!%p832_p2), %s965_s0, 128, %s156_s28, [#allocation3]  }
  0x2e   : > { %p975_p13 = scmp.lt.s32.totalorder %s733_s16, 3  ;;  %p976_p9 = scmp.ge.s32.totalorder %s733_s16, 1 }
  0x2f   : > { %s736_s23 = smov [#allocation5]   ;;  %s596_s4 = scalar_lea.hbm %s966_s1, 128 }
  0x30   : > { %p864_p10 = pnand %p976_p9, %p975_p13  ;;  %s176_s27 = sshll.u32 %s736_s23, 4  ;;  %s177_s27 = int_to_ptr.vmem [resolvable:$true] %s176_s27 }
  0x31   : > { %p597_p6 = scmp.ne.s32.totalorder %s966_s1, %s596_s4  ;;  %p603_p3 = scmp.lt.u32.totalorder %s596_s4, %s596_s4 }
  0x32   : > { %s977_s22 = scalar_select %p864_p10, 1, 0 }
  0x33   : > { %p599_p12 = pnand %p597_p6, %p568_p8  ;;  %p605_p5 = scmp.lt.u32.totalorder %s596_s4, %s966_s1 }
  0x35   : > { %p600_p0 = pneg %p599_p12  ;;  %p606_p11 = por %p605_p5, %p603_p3 }
  0x37   : > { %p607_p1 = pnand %p606_p11, %p600_p0 }
  0x39   : > { %610 = shalt.err (!%p607_p1)
}
  0x3a   : > { %s611_s8 = scalar_lea.vmem %s177_s27, 128  ;;  %s618_s12 = scalar_lea.vmem %s177_s27, 256 }
  0x3b   : > { %p612_p7 = scmp.ne.s32.totalorder %s177_s27, %s611_s8  ;;  %p619_p9 = scmp.lt.s32.totalorder %s177_s27, %s177_s27 }
  0x3c   : > { %p620_p10 = scmp.lt.s32.totalorder %s618_s12, %s611_s8 }
  0x3d   : > { %p614_p4 = pnand %p612_p7, %p568_p8 }
  0x3e   : > { %p621_p6 = por %p620_p10, %p619_p9 }
  0x3f   : > { %p615_p13 = pneg %p614_p4 }
  0x41   : > { %p622_p12 = pnand %p621_p6, %p615_p13 }
  0x43   : > { %625 = shalt.err (!%p622_p12)
}
  0x44   : > { %480 = dma.hbm_to_vmem [thread:$0]  (!%p832_p2), %s966_s1, 128, %s177_s27, [#allocation6]  }
  0x45   : > { %p978_p0 = scmp.ne.s32.totalorder %s977_s22, 0 }
  0x46   : > { %s187_s20 = sand.u32 (!%p978_p0), 1, %s721_s13   ;;  %p979_p8 = scmp.ne.s32.totalorder (!%p978_p0), %s971_s21, 0 }
  0x47   : > { %185 = sbr.rel (%p978_p0) target bundleno = 131 (0x83), region = 28  ;;  %s447_s23 = sshll.u32 (!%p978_p0), %s187_s20, 3 }
  0x48   : > { %s188_s30 = scalar_lea.sflag (!%p978_p0), [#allocation3], %s187_s20  ;;  %s191_s3 = scalar_lea.vmem (!%p978_p0), [#allocation2], %s447_s23 }
  0x4e   : > { %691 = dma.done.wait (%p979_p8), %s188_s30, 128  }
  0x4f   : > { %693 = vsyncadd (%p979_p8), %s188_s30, 4294967168  ;;  %s197_s29 = scalar_lea.sflag [#allocation6], %s187_s20  ;;  %s200_s4 = scalar_lea.vmem [#allocation5], %s447_s23 }
  0x50   : > { %695 = dma.done.wait (%p979_p8), %s197_s29, 128  }
  0x51   : > { %697 = vsyncadd (%p979_p8), %s197_s29, 4294967168  ;;  %s449_s22 = sshll.u32 %s725_s14, 10  ;;  %v245_v0 = vlaneseq  ;;  %s223_s27 = sand.u32 1, %s709_s10   ;;  %v251_v6 = vld [vmem:[%s191_s3] sm:$0xff]  ;;  %v252_v7 = vld [vmem:[%s200_s4] sm:$0xff]  ;;  %v737_v10 = vmov 0.0  }
  0x52   : > { %s255_s5 = ssub.s32 512, %s449_s22  ;;  %s466_s6 = smul.u32 56, %s223_s27 }
  0x53   : > { %v246_v1 = vshrl.u32 %v245_v0, 7  ;;  %v248_v2 = vand.u32 127, %v245_v0  ;;  %v256_v4 = vstv %s255_s5  ;;  %s467_s28 = smul.u32 896, %s725_s14  ;;  %s913_s18 = scalar_lea.sflag [#allocation4], %s223_s27 }
  0x54   : > { %s225_s21 = scalar_lea.vmem [#allocation7], %s466_s6  ;;  %p980_p10 = scmp.ne.s32.totalorder %s972_s25, 0 }
  0x55   : > { %v249_v3 = vmul.u32 128, %v246_v1  ;;  %s334_s7 = sshll.u32 %s225_s21, 4  ;;  %s907_s17 = scalar_lea.hbm %s967_s2, %s467_s28  ;;  %s909_s7 = int_to_ptr.vmem [resolvable:$true] %s334_s7 }
  0x56   : > { %s626_s14 = scalar_lea.vmem %s909_s7, 896  ;;  %s738_s20 = smov [#allocation7]  }
  0x57   : > { %v250_v5 = vadd.s32 %v249_v3, %v248_v2  ;;  %p627_p2 = scmp.ne.s32.totalorder %s909_s7, %s626_s14  ;;  %s630_s23 = sshll.u32 %s738_s20, 4  ;;  %s631_s23 = int_to_ptr.vmem [resolvable:$false] %s630_s23 }
  0x58   : > { %s632_s30 = scalar_lea.vmem %s631_s23, 1792  ;;  %p633_p11 = scmp.lt.s32.totalorder %s909_s7, %s631_s23 }
  0x59   : > { %vm257_vm0 = vcmp.lt.s32.totalorder %v250_v5, %v256_v4  ;;  %p628_p3 = pnand %p627_p2, %p980_p10  ;;  %p634_p1 = scmp.lt.s32.totalorder %s632_s30, %s626_s14 }
  0x5a   : > { %v258_v8 = vsel %vm257_vm0, %v251_v6, 0.0  ;;  %v259_v9 = vsel %vm257_vm0, %v252_v7, 0.0  ;;  %v450_v11 = vsel %vm257_vm0, 1.0, %v737_v10 }
  0x5b   : > { %562 = vlog2.f32 %v258_v8  ;;  %v267_v12 = vsub.f32 1.0, %v258_v8  ;;  %v276_v13 = vmul.f32 %v259_v9, %v258_v8  ;;  %vm262_vm1 = vcmp.eq.f32.partialorder %v259_v9, 0.0  ;;  %452 = vst [vmem:[%s225_s21 + $0x8] sm:$0xff] %v258_v8  ;;  %454 = vst [vmem:[%s225_s21 + $0x10] sm:$0xff] %v259_v9  ;;  %p629_p5 = pneg %p628_p3  ;;  %p635_p7 = por %p634_p1, %p633_p11 }
  0x5c   : > { %v263_v14 = vsel %vm262_vm1, %v450_v11, 0.0  ;;  %v272_v20 = vsub.f32 1.0, %v259_v9 }
  0x5d   : > { %564 = vlog2.f32 %v267_v12  ;;  %295 = vst [vmem:[%s225_s21] sm:$0xff] %v276_v13  ;;  %456 = vst [vmem:[%s225_s21 + $0x18] sm:$0xff] %v263_v14  ;;  %p636_p4 = pnand %p635_p7, %p629_p5 }
  0x65   : > { %v563_v15 = vpop.eup %562 }
  0x66   : > { %v265_v16 = vmul.f32 0.6931472, %v563_v15 }
  0x67   : > { %v565_v17 = vpop.eup %564 }
  0x68   : > { %v266_v18 = vmax.f32 %v265_v16, -100.0  ;;  %v269_v19 = vmul.f32 0.6931472, %v565_v17 }
  0x6a   : > { %v270_v21 = vmax.f32 %v269_v19, -100.0  ;;  %v271_v22 = vmul.f32 %v266_v18, %v259_v9 }
  0x6c   : > { %v273_v23 = vmul.f32 %v272_v20, %v270_v21 }
  0x6e   : > { %v274_v24 = vadd.f32 %v273_v23, %v271_v22 }
  0x70   : > { %v275_v25 = vsub.f32 0.0, %v274_v24 }
  0x72   : > { %v285_v26 = vmul.f32 %v275_v25, %v259_v9  ;;  %v288_v27 = vmul.f32 %v275_v25, %v263_v14  ;;  %462 = vst [vmem:[%s225_s21 + $0x30] sm:$0xff] %v275_v25 }
  0x74   : > { %458 = vst [vmem:[%s225_s21 + $0x20] sm:$0xff] %v285_v26  ;;  %460 = vst [vmem:[%s225_s21 + $0x28] sm:$0xff] %v288_v27 }
  0x75   : > { %639 = shalt.err (!%p636_p4)
}
  0x76   : > { %s640_s3 = scalar_lea.hbm %s907_s17, 896  ;;  %s644_s22 = scalar_lea.hbm %s967_s2, 1792 }
  0x77   : > { %p641_p13 = scmp.ne.s32.totalorder %s907_s17, %s640_s3  ;;  %p645_p12 = scmp.lt.u32.totalorder %s907_s17, %s967_s2 }
  0x78   : > { %p646_p0 = scmp.lt.u32.totalorder %s644_s22, %s640_s3  ;;  %p648_p2 = scmp.lt.u32.totalorder %s640_s3, %s907_s17 }
  0x79   : > { %p642_p9 = pnand %p641_p13, %p980_p10 }
  0x7a   : > { %p647_p8 = por %p646_p0, %p645_p12 }
  0x7b   : > { %p643_p6 = pneg %p642_p9 }
  0x7c   : > { %p649_p3 = por %p648_p2, %p647_p8 }
  0x7e   : > { %p650_p5 = pnand %p649_p3, %p643_p6 }
  0x80   : > { %653 = shalt.err (!%p650_p5)
}
  0x81   : > { %s739_s6 = smov 128   ;;  %s740_s21 = smov 8  }
  0x82   : > { %472 = dma.vmem_to_hbm [thread:$0]  (%p980_p10), %s909_s7, 896, %s907_s17, %s913_s18, %s739_s6, %s739_s6, %s740_s21  }
  0x83 PF: > { %s349_s28 = sand.u32 1, %s705_s9   ;;  %p981_p11 = scmp.ne.s32.totalorder %s973_s26, 0 }
  0x84   : > { %p982_p1 = scmp.ge.s32.totalorder %s733_s16, 2  ;;  %s350_s8 = scalar_lea.sflag [#allocation4], %s349_s28 }
  0x86   : > { %p482_p7 = pnand %p982_p1, %p981_p11 }
  0x88   : > { %699 = dma.done.wait (!%p482_p7), %s350_s8, 896  }
  0x89   : > { %701 = vsyncadd (!%p482_p7), %s350_s8, 4294966400  ;;  %s21_s16 = sadd.s32 1, %s733_s16   ;;  %s983_s9 = smov %s709_s10 }
  0x8a   : > { %p18_p4 = scmp.ge.s32.totalorder %s21_s16, 4   ;;  %s984_s10 = smov %s713_s11 }
  0x8b   : > { %s985_s11 = smov %s814_s24  ;;  %s986_s12 = smov %s721_s13 }
  0x8c   : > { %s955_s13 = smov 0   ;;  %s987_s14 = smov %s729_s15 }
  0x8d   : > { %s988_s15 = smov %s990_s19  ;;  %20 = sbr.rel (!%p18_p4) target bundleno = 9 (0x9), region = 96 }
  0x94   :  { %355 = vsyncpa [#allocation3], 1 }
  0x95   :  { %357 = vsyncpa [#allocation3 + $0x1], 1 }
  0x96   :  { %358 = vsyncpa [#allocation6], 1 }
  0x97   :  { %360 = vsyncpa [#allocation6 + $0x1], 1 }
  0x98   :  { %361 = vsyncpa [#allocation4], 1 }
  0x99   :  { %363 = vsyncpa [#allocation4 + $0x1], 1 }

</bundles_post_ra>
